<compile_context>
chip_gen: v7x
topology: tpu7x:2x2x1
jax: 0.10.0
libtpu: 0.0.40
codegen_flags: <defaults>
</compile_context>

<pallas_src>
import jax
import jax.numpy as jnp
from jax.experimental import pallas as pl
from jax.experimental.pallas import tpu as pltpu

HIDDEN = 64            # per-net hidden width
FUSED = 2 * HIDDEN     # fused hidden lanes (policy | termination)


def _round_up(n, m):
    return ((n + m - 1) // m) * m


def _lower_kernel(x_ref, w1_ref, b1_ref, w2_ref, b2_ref, w3_ref, b3_ref,
                  a_ref, c_ref, out_ref):
    # bf16 operands for the MXU, f32 accumulation.
    x = x_ref[...].astype(jnp.bfloat16)
    h = jnp.tanh(jnp.dot(x, w1_ref[...], preferred_element_type=jnp.float32)
                 + b1_ref[...])
    h = jnp.tanh(jnp.dot(h.astype(jnp.bfloat16), w2_ref[...],
                         preferred_element_type=jnp.float32) + b2_ref[...])
    z = (jnp.dot(h.astype(jnp.bfloat16), w3_ref[...],
                 preferred_element_type=jnp.float32) + b3_ref[...])
    # Single-tanh head: policy lanes a=1,c=0 (Tanh); termination lane a=0.5,c=0.5
    # (Sigmoid via tanh identity, 0.5 pre-scale already folded into W3/b3);
    # padding lanes a=0,c=0.
    out_ref[...] = a_ref[...] * jnp.tanh(z) + c_ref[...]


def prepare_fused_params(params, action_dim, hidden=HIDDEN):
    """Build the fused/packed bf16 weight tensors ONCE (outside the hot path)."""
    assert 1 <= action_dim, "action_dim must be >= 1"
    out_w = _round_up(action_dim + 1, 8)      # packed output lanes: [mean | term | pad]

    w1 = jnp.concatenate([params["pw1"], params["tw1"]], axis=1)        # (obs, 128)
    b1 = jnp.concatenate([params["pb1"], params["tb1"]], axis=1)        # (1, 128)

    w2 = jnp.zeros((FUSED, FUSED), jnp.float32)
    w2 = w2.at[:hidden, :hidden].set(params["pw2"])
    w2 = w2.at[hidden:, hidden:].set(params["tw2"])                     # (128, 128)
    b2 = jnp.concatenate([params["pb2"], params["tb2"]], axis=1)        # (1, 128)

    # Layer 3: policy head -> lanes [0:A]; termination head -> lane A, with the
    # 0.5 scale for sigmoid(u) = 0.5*tanh(u/2) + 0.5 folded into W3/b3.
    w3 = jnp.zeros((FUSED, out_w), jnp.float32)
    w3 = w3.at[:hidden, :action_dim].set(params["pw3"])
    w3 = w3.at[hidden:, action_dim:action_dim + 1].set(0.5 * params["tw3"])
    b3 = jnp.zeros((1, out_w), jnp.float32)
    b3 = b3.at[:, :action_dim].set(params["pb3"])
    b3 = b3.at[:, action_dim:action_dim + 1].set(0.5 * params["tb3"])

    # Per-lane affine applied to tanh(z): out = a*tanh(z) + c.
    a = jnp.zeros((1, out_w), jnp.float32)
    a = a.at[:, :action_dim].set(1.0).at[:, action_dim].set(0.5)
    c = jnp.zeros((1, out_w), jnp.float32).at[:, action_dim].set(0.5)

    return {"w1": w1.astype(jnp.bfloat16), "b1": b1.astype(jnp.float32),
            "w2": w2.astype(jnp.bfloat16), "b2": b2.astype(jnp.float32),
            "w3": w3.astype(jnp.bfloat16), "b3": b3.astype(jnp.float32),
            "a": a, "c": c}


def _batch_tile(B, block_b):
    """Batch tile: multiple of 8, capped so v7x gets >=2 grid steps when B allows."""
    if _round_up(B, 8) <= 8:
        return 8
    two_way = _round_up(-(-B // 2), 8)      # ceil(B/2) rounded up to 8
    return max(8, min(block_b, two_way))


def lower_network_forward(x, fused, std, action_dim, block_b=2048):
    """x: (B, obs_dim) f32.  Returns dict matching torch LowerNetwork.forward."""
    B, obs_dim = x.shape
    out_w = fused["w3"].shape[1]
    tb = _batch_tile(B, block_b)
    grid = (pl.cdiv(B, tb),)                # ragged last block: OOB writes dropped

    out = pl.pallas_call(
        _lower_kernel,
        out_shape=jax.ShapeDtypeStruct((B, out_w), jnp.float32),
        grid_spec=pltpu.PrefetchScalarGridSpec(
            num_scalar_prefetch=0,
            grid=grid,
            in_specs=[
                pl.BlockSpec((tb, obs_dim), lambda i: (i, 0)),       # x tile
                pl.BlockSpec((obs_dim, FUSED), lambda i: (0, 0)),    # W1 (resident)
                pl.BlockSpec((1, FUSED), lambda i: (0, 0)),          # b1
                pl.BlockSpec((FUSED, FUSED), lambda i: (0, 0)),      # W2
                pl.BlockSpec((1, FUSED), lambda i: (0, 0)),          # b2
                pl.BlockSpec((FUSED, out_w), lambda i: (0, 0)),      # W3 (packed)
                pl.BlockSpec((1, out_w), lambda i: (0, 0)),          # b3
                pl.BlockSpec((1, out_w), lambda i: (0, 0)),          # head scale a
                pl.BlockSpec((1, out_w), lambda i: (0, 0)),          # head offset c
            ],
            out_specs=pl.BlockSpec((tb, out_w), lambda i: (i, 0)),
        ),
        compiler_params=pltpu.CompilerParams(
            dimension_semantics=("parallel",),   # shard batch across v7x TCs
        ),
    )(x, fused["w1"], fused["b1"], fused["w2"], fused["b2"],
      fused["w3"], fused["b3"], fused["a"], fused["c"])

    mean_action = out[:, :action_dim]                       # Tanh already applied
    termination_prob = out[:, action_dim:action_dim + 1]    # Sigmoid already applied
    # std_action is independent of x: softplus of the (1, action_dim) parameter,
    # broadcast in the wrapper (matches F.softplus(self.std).expand(B, -1)).
    std_action = jnp.broadcast_to(jax.nn.softplus(std), (B, action_dim))
    return {"mean_action": mean_action,
            "std_action": std_action,
            "termination_prob": termination_prob}


def init_params(key, obs_dim, action_dim, hidden=HIDDEN):
    """PyTorch-Linear-style init U(-1/sqrt(fan_in), 1/sqrt(fan_in)); std = zeros."""
    params = {}
    keys = jax.random.split(key, 12)
    ki = 0
    for prefix, out_dim in (("p", action_dim), ("t", 1)):
        dims = [(obs_dim, hidden), (hidden, hidden), (hidden, out_dim)]
        for li, (din, dout) in enumerate(dims, start=1):
            bound = 1.0 / jnp.sqrt(jnp.float32(din))
            params[f"{prefix}w{li}"] = jax.random.uniform(
                keys[ki], (din, dout), jnp.float32, minval=-bound, maxval=bound)
            ki += 1
            params[f"{prefix}b{li}"] = jax.random.uniform(
                keys[ki], (1, dout), jnp.float32, minval=-bound, maxval=bound)
            ki += 1
    params["std"] = jnp.zeros((1, action_dim), jnp.float32)
    return params


def reference_forward(x, params):
    """Pure-JAX f32 reference of the torch module (for correctness check)."""
    def mlp(x, p):
        h = jnp.tanh(x @ params[p + "w1"] + params[p + "b1"])
        h = jnp.tanh(h @ params[p + "w2"] + params[p + "b2"])
        return h @ params[p + "w3"] + params[p + "b3"]
    mean_action = jnp.tanh(mlp(x, "p"))
    termination_prob = jax.nn.sigmoid(mlp(x, "t"))
    std_action = jnp.broadcast_to(jax.nn.softplus(params["std"]),
                                  (x.shape[0], params["pw3"].shape[1]))
    return {"mean_action": mean_action,
            "std_action": std_action,
            "termination_prob": termination_prob}


if __name__ == "__main__":
    B, OBS_DIM, ACTION_DIM = 8, 16, 6

    key = jax.random.PRNGKey(0)
    k_x, k_p = jax.random.split(key)
    x = jax.random.normal(k_x, (B, OBS_DIM), dtype=jnp.float32)
    params = init_params(k_p, OBS_DIM, ACTION_DIM)
    fused = prepare_fused_params(params, ACTION_DIM)

    out = lower_network_forward(x, fused, params["std"], ACTION_DIM)
    jax.block_until_ready(out)

    # sanity: shapes + numerical parity with the pure-JAX f32 reference
    assert out["mean_action"].shape == (B, ACTION_DIM)
    assert out["std_action"].shape == (B, ACTION_DIM)
    assert out["termination_prob"].shape == (B, 1)

    ref = reference_forward(x, params)
    # bf16 matmuls vs f32 reference: outputs are tanh/sigmoid-bounded, 2e-2 is ample.
    for k in ("mean_action", "std_action", "termination_prob"):
        assert jnp.allclose(out[k], ref[k], atol=2e-2, rtol=2e-2), k

    print("KERNEL_OK")
</pallas_src>

<mosaic_0001>
module attributes {stable_mosaic.version = 11 : i64} {
  func.func @_lower_kernel(%arg0: i32, %arg1: memref<8x16xf32, #tpu.memory_space<vmem>>, %arg2: memref<16x128xbf16, #tpu.memory_space<vmem>>, %arg3: memref<1x128xf32, #tpu.memory_space<vmem>>, %arg4: memref<128x128xbf16, #tpu.memory_space<vmem>>, %arg5: memref<1x128xf32, #tpu.memory_space<vmem>>, %arg6: memref<128x8xbf16, #tpu.memory_space<vmem>>, %arg7: memref<1x8xf32, #tpu.memory_space<vmem>>, %arg8: memref<1x8xf32, #tpu.memory_space<vmem>>, %arg9: memref<1x8xf32, #tpu.memory_space<vmem>>, %arg10: memref<8x8xf32, #tpu.memory_space<vmem>>) attributes {dimension_semantics = [#tpu.dimension_semantics<parallel>], iteration_bounds = array<i64: 1>, scalar_prefetch = 0 : i64, scratch_operands = 0 : i64, tpu.core_type = #tpu.core_type<tc>, window_params = [{transform_indices = @transform_0, window_bounds = array<i64: 8, 16>}, {pipeline_mode = #tpu.pipeline_mode<synchronous>, transform_indices = @transform_1, window_bounds = array<i64: 16, 128>}, {pipeline_mode = #tpu.pipeline_mode<synchronous>, transform_indices = @transform_2, window_bounds = array<i64: 1, 128>}, {pipeline_mode = #tpu.pipeline_mode<synchronous>, transform_indices = @transform_3, window_bounds = array<i64: 128, 128>}, {pipeline_mode = #tpu.pipeline_mode<synchronous>, transform_indices = @transform_4, window_bounds = array<i64: 1, 128>}, {pipeline_mode = #tpu.pipeline_mode<synchronous>, transform_indices = @transform_5, window_bounds = array<i64: 128, 8>}, {pipeline_mode = #tpu.pipeline_mode<synchronous>, transform_indices = @transform_6, window_bounds = array<i64: 1, 8>}, {pipeline_mode = #tpu.pipeline_mode<synchronous>, transform_indices = @transform_7, window_bounds = array<i64: 1, 8>}, {pipeline_mode = #tpu.pipeline_mode<synchronous>, transform_indices = @transform_8, window_bounds = array<i64: 1, 8>}, {transform_indices = @transform_9, window_bounds = array<i64: 8, 8>}]} {
    %c0 = arith.constant 0 : index
    %c0_0 = arith.constant 0 : index
    %0 = vector.load %arg1[%c0, %c0_0] : memref<8x16xf32, #tpu.memory_space<vmem>>, vector<8x16xf32>
    %1 = arith.truncf %0 : vector<8x16xf32> to vector<8x16xbf16>
    %c0_1 = arith.constant 0 : index
    %c0_2 = arith.constant 0 : index
    %2 = vector.load %arg2[%c0_1, %c0_2] : memref<16x128xbf16, #tpu.memory_space<vmem>>, vector<16x128xbf16>
    %cst = arith.constant dense<0.000000e+00> : vector<8x128xf32>
    %3 = tpu.matmul %1, %2, %cst {dimension_numbers = #tpu.dot_dimension_numbers<[1], [0], [0], [1], [0, 0, 1, 1], [], []>} : vector<8x16xbf16>, vector<16x128xbf16>, vector<8x128xf32> -> vector<8x128xf32>
    %c0_3 = arith.constant 0 : index
    %c0_4 = arith.constant 0 : index
    %4 = vector.load %arg3[%c0_3, %c0_4] : memref<1x128xf32, #tpu.memory_space<vmem>>, vector<1x128xf32>
    %5 = vector.broadcast %4 : vector<1x128xf32> to vector<8x128xf32>
    %6 = arith.addf %3, %5 : vector<8x128xf32>
    %7 = math.tanh %6 : vector<8x128xf32>
    %8 = arith.truncf %7 : vector<8x128xf32> to vector<8x128xbf16>
    %c0_5 = arith.constant 0 : index
    %c0_6 = arith.constant 0 : index
    %9 = vector.load %arg4[%c0_5, %c0_6] : memref<128x128xbf16, #tpu.memory_space<vmem>>, vector<128x128xbf16>
    %cst_7 = arith.constant dense<0.000000e+00> : vector<8x128xf32>
    %10 = tpu.matmul %8, %9, %cst_7 {dimension_numbers = #tpu.dot_dimension_numbers<[1], [0], [0], [1], [0, 0, 1, 1], [], []>} : vector<8x128xbf16>, vector<128x128xbf16>, vector<8x128xf32> -> vector<8x128xf32>
    %c0_8 = arith.constant 0 : index
    %c0_9 = arith.constant 0 : index
    %11 = vector.load %arg5[%c0_8, %c0_9] : memref<1x128xf32, #tpu.memory_space<vmem>>, vector<1x128xf32>
    %12 = vector.broadcast %11 : vector<1x128xf32> to vector<8x128xf32>
    %13 = arith.addf %10, %12 : vector<8x128xf32>
    %14 = math.tanh %13 : vector<8x128xf32>
    %15 = arith.truncf %14 : vector<8x128xf32> to vector<8x128xbf16>
    %c0_10 = arith.constant 0 : index
    %c0_11 = arith.constant 0 : index
    %16 = vector.load %arg6[%c0_10, %c0_11] : memref<128x8xbf16, #tpu.memory_space<vmem>>, vector<128x8xbf16>
    %cst_12 = arith.constant dense<0.000000e+00> : vector<8x8xf32>
    %17 = tpu.matmul %15, %16, %cst_12 {dimension_numbers = #tpu.dot_dimension_numbers<[1], [0], [0], [1], [0, 0, 1, 1], [], []>} : vector<8x128xbf16>, vector<128x8xbf16>, vector<8x8xf32> -> vector<8x8xf32>
    %c0_13 = arith.constant 0 : index
    %c0_14 = arith.constant 0 : index
    %18 = vector.load %arg7[%c0_13, %c0_14] : memref<1x8xf32, #tpu.memory_space<vmem>>, vector<1x8xf32>
    %19 = vector.broadcast %18 : vector<1x8xf32> to vector<8x8xf32>
    %20 = arith.addf %17, %19 : vector<8x8xf32>
    %c0_15 = arith.constant 0 : index
    %c0_16 = arith.constant 0 : index
    %21 = vector.load %arg8[%c0_15, %c0_16] : memref<1x8xf32, #tpu.memory_space<vmem>>, vector<1x8xf32>
    %22 = math.tanh %20 : vector<8x8xf32>
    %23 = vector.broadcast %21 : vector<1x8xf32> to vector<8x8xf32>
    %24 = arith.mulf %23, %22 : vector<8x8xf32>
    %c0_17 = arith.constant 0 : index
    %c0_18 = arith.constant 0 : index
    %25 = vector.load %arg9[%c0_17, %c0_18] : memref<1x8xf32, #tpu.memory_space<vmem>>, vector<1x8xf32>
    %26 = vector.broadcast %25 : vector<1x8xf32> to vector<8x8xf32>
    %27 = arith.addf %24, %26 : vector<8x8xf32>
    %c0_19 = arith.constant 0 : index
    %c0_20 = arith.constant 0 : index
    %28 = vector.load %arg10[%c0_19, %c0_20] : memref<8x8xf32, #tpu.memory_space<vmem>>, vector<8x8xf32>
    tpu.vector_store %arg10[%c0_19, %c0_20], %27 {strides = array<i32>} : memref<8x8xf32, #tpu.memory_space<vmem>>, vector<8x8xf32>,
    return
  }
  func.func @transform_0(%arg0: i32) -> (i32, i32) {
    %c0_i32 = arith.constant 0 : i32
    %c0_i32_0 = arith.constant 0 : i32
    return %arg0, %c0_i32 : i32, i32
  }
  func.func @transform_1(%arg0: i32) -> (i32, i32) {
    %c0_i32 = arith.constant 0 : i32
    %c0_i32_0 = arith.constant 0 : i32
    %c0_i32_1 = arith.constant 0 : i32
    return %c0_i32, %c0_i32_0 : i32, i32
  }
  func.func @transform_2(%arg0: i32) -> (i32, i32) {
    %c0_i32 = arith.constant 0 : i32
    %c0_i32_0 = arith.constant 0 : i32
    %c0_i32_1 = arith.constant 0 : i32
    return %c0_i32, %c0_i32_0 : i32, i32
  }
  func.func @transform_3(%arg0: i32) -> (i32, i32) {
    %c0_i32 = arith.constant 0 : i32
    %c0_i32_0 = arith.constant 0 : i32
    %c0_i32_1 = arith.constant 0 : i32
    return %c0_i32, %c0_i32_0 : i32, i32
  }
  func.func @transform_4(%arg0: i32) -> (i32, i32) {
    %c0_i32 = arith.constant 0 : i32
    %c0_i32_0 = arith.constant 0 : i32
    %c0_i32_1 = arith.constant 0 : i32
    return %c0_i32, %c0_i32_0 : i32, i32
  }
  func.func @transform_5(%arg0: i32) -> (i32, i32) {
    %c0_i32 = arith.constant 0 : i32
    %c0_i32_0 = arith.constant 0 : i32
    %c0_i32_1 = arith.constant 0 : i32
    return %c0_i32, %c0_i32_0 : i32, i32
  }
  func.func @transform_6(%arg0: i32) -> (i32, i32) {
    %c0_i32 = arith.constant 0 : i32
    %c0_i32_0 = arith.constant 0 : i32
    %c0_i32_1 = arith.constant 0 : i32
    return %c0_i32, %c0_i32_0 : i32, i32
  }
  func.func @transform_7(%arg0: i32) -> (i32, i32) {
    %c0_i32 = arith.constant 0 : i32
    %c0_i32_0 = arith.constant 0 : i32
    %c0_i32_1 = arith.constant 0 : i32
    return %c0_i32, %c0_i32_0 : i32, i32
  }
  func.func @transform_8(%arg0: i32) -> (i32, i32) {
    %c0_i32 = arith.constant 0 : i32
    %c0_i32_0 = arith.constant 0 : i32
    %c0_i32_1 = arith.constant 0 : i32
    return %c0_i32, %c0_i32_0 : i32, i32
  }
  func.func @transform_9(%arg0: i32) -> (i32, i32) {
    %c0_i32 = arith.constant 0 : i32
    %c0_i32_0 = arith.constant 0 : i32
    return %arg0, %c0_i32 : i32, i32
  }
}

</mosaic_0001>

<bundles_post_ra>
// kernel: tpu_custom_call.1
= control target key start
LH: loop header
LB: loop body
LE: loop exit
PB: predicated region body
PF: predicated region fallthrough
CT: control target
= control target key end

     0   :  { %14 = vsyncpa [#allocation3], 0  ;;  %s704_s0 = inlined_call_operand.vmem [shape: f32[8,16], index: 0, kind: input, shape index: {}]   ;;  %s705_s1 = inlined_call_operand.hbm [shape: bf16[16,128], index: 1, kind: input, shape index: {}]   ;;  %s706_s2 = inlined_call_operand.vmem [shape: f32[1,128], index: 2, kind: input, shape index: {}]   ;;  %s707_s3 = inlined_call_operand.vmem [shape: bf16[128,128], index: 3, kind: input, shape index: {}]   ;;  %s708_s4 = inlined_call_operand.vmem [shape: f32[1,128], index: 4, kind: input, shape index: {}]   ;;  %s709_s5 = inlined_call_operand.vmem [shape: bf16[128,8], index: 5, kind: input, shape index: {}]   ;;  %s710_s6 = inlined_call_operand.vmem [shape: f32[1,8], index: 6, kind: input, shape index: {}]   ;;  %s711_s7 = inlined_call_operand.vmem [shape: f32[1,8], index: 7, kind: input, shape index: {}]   ;;  %s712_s8 = inlined_call_operand.vmem [shape: f32[1,8], index: 8, kind: input, shape index: {}]   ;;  %s713_s9 = inlined_call_operand.hbm [shape: f32[8,8], index: 9, kind: output, shape index: {}]  }
   0x1   :  { %15 = vsyncpa [#allocation4], 0  ;;  %s535_s30 = smov [#allocation2]   ;;  %s487_s13 = scalar_lea.hbm %s705_s1, 128 }
   0x2   :  { %s23_s10 = sshll.u32 %s535_s30, 4  ;;  %p488_p0 = scmp.ne.s32.totalorder %s705_s1, %s487_s13  ;;  %s24_s10 = int_to_ptr.vmem [resolvable:$true] %s23_s10 }
   0x3   :  { %p491_p1 = scmp.lt.u32.totalorder %s487_s13, %s705_s1 }
   0x5   :  { %p493_p2 = pnand %p491_p1, %p488_p0 }
   0x7   :  { %496 = shalt.err (!%p493_p2)
}
   0x8   :  { %s497_s18 = scalar_lea.vmem %s24_s10, 128  ;;  %p502_p4 = scmp.lt.s32.totalorder %s24_s10, %s24_s10 }
   0x9   :  { %p498_p3 = scmp.ne.s32.totalorder %s24_s10, %s497_s18  ;;  %p503_p5 = scmp.lt.s32.totalorder %s497_s18, %s497_s18 }
   0xb   :  { %p504_p6 = por %p503_p5, %p502_p4 }
   0xd   :  { %p505_p7 = pnand %p504_p6, %p498_p3 }
   0xf   :  { %508 = shalt.err (!%p505_p7)
}
  0x10   :  { %s536_s19 = smov 64   ;;  %s537_s20 = smov 4  }
  0x11   :  { %29 = dma.hbm_to_vmem [thread:$0]  %s705_s1, 128, %s24_s10, [#allocation3], %s536_s19, %s536_s19, %s537_s20  }
  0x12   :  { %531 = dma.done.wait [#allocation3], 128  }
  0x13   :  { %532 = vsyncadd [#allocation3], 4294967168  ;;  %v538_v0 = vmov 0.0   ;;  %vm539_vm0 = vmmov 0   ;;  %v464_v1 = vld [vmem:[#allocation2] sm:$0xff]   ;;  %vm65_vm1 = vcmask 130048  }
  0x14   :  { %412 = vmatprep.subr.bf16.mxu0 %v538_v0  ;;  %414 = vmatprep.mubr.msk.bf16.mxu0 %vm539_vm0, %v538_v0  ;;  %v48_v2 = vld [vmem:[%s704_s0] sm:$0xff]  ;;  %v466_v5 = vld [vmem:[%s707_s3 + $0x8] sm:$0xff]   ;;  %v467_v6 = vld [vmem:[%s707_s3 + $0x10] sm:$0xff]   ;;  %s540_s17 = smov [#allocation5]   ;;  %vm352_vm2 = vcmask 64512  }
  0x15   :  { %418 = vmatprep.subr.bf16.mxu1 %v538_v0  ;;  %434 = vmatprep.mubr.msk.bf16.mxu1 %vm539_vm0, %v538_v0  ;;  %v49_v3 = vpack.c.bf16 %v48_v2, %v48_v2  ;;  %v465_v4 = vld [vmem:[%s707_s3] sm:$0xff]   ;;  %v468_v7 = vld [vmem:[%s707_s3 + $0x18] sm:$0xff]   ;;  %v470_v9 = vld [vmem:[%s707_s3 + $0x28] sm:$0xff]   ;;  %s360_s18 = sshll.u32 %s540_s17, 4  ;;  %s361_s18 = int_to_ptr.vmem [resolvable:$true] %s360_s18 }
  0x16   :  { %413 = vmatpush3.bf16.msra.mxu0 %v464_v1  ;;  %419 = vmatpush3.bf16.msra.mxu1 %v465_v4  ;;  %v469_v8 = vld [vmem:[%s707_s3 + $0x20] sm:$0xff]   ;;  %v471_v10 = vld [vmem:[%s707_s3 + $0x30] sm:$0xff]   ;;  %v472_v11 = vld [vmem:[%s707_s3 + $0x38] sm:$0xff]   ;;  %p514_p9 = scmp.lt.s32.totalorder %s361_s18, %s361_s18 }
  0x17   :  { %438 = vmatprep.subr.bf16.mxu0 %v538_v0  ;;  %420 = vmatprep.subr.bf16.mxu1 %v538_v0  ;;  %v473_v12 = vld [vmem:[%s709_s5] sm:$0xff]   ;;  %v474_v13 = vld [vmem:[%s709_s5 + $0x8] sm:$0xff]   ;;  %v475_v14 = vld [vmem:[%s709_s5 + $0x10] sm:$0xff]  }
  0x18   :  { %v476_v15 = vld [vmem:[%s709_s5 + $0x18] sm:$0xff]   ;;  %v369_v16 = vld [vmem:[%s706_s2] ss:$0 sm:$0xff]  ;;  %v478_v25 = vld [vmem:[%s709_s5 + $0x28] sm:$0xff]  }
  0x19   :  { %415 = vmatmul.mubr.msk.bf16.vlgmr.msra.gmra.mrb[0].mxu0 %vm65_vm1, %v49_v3  ;;  %v477_v24 = vld [vmem:[%s709_s5 + $0x20] sm:$0xff]   ;;  %v479_v26 = vld [vmem:[%s709_s5 + $0x30] sm:$0xff]   ;;  %v480_v27 = vld [vmem:[%s709_s5 + $0x38] sm:$0xff]  }
  0x1a   :  { %454 = vmatprep.mubr.msk.bf16.mxu0 %vm539_vm0, %v538_v0  ;;  %421 = vmatpush3.bf16.msra.mxu1 %v466_v5  ;;  %v372_v28 = vld [vmem:[%s708_s4] ss:$0 sm:$0xff] }
  0x1b   :  { %422 = vmatprep.subr.bf16.mxu1 %v538_v0  ;;  %439 = vmatpush3.bf16.msra.mxu0 %v473_v12  ;;  %v381_v36 = vld [vmem:[%s710_s6] ss:$0 sm:$0xff]  ;;  %s509_s6 = scalar_lea.vmem %s361_s18, 128 }
  0x1c   :  { %440 = vmatprep.subr.bf16.mxu0 %v538_v0  ;;  %v390_v42 = vld [vmem:[%s711_s7] ss:$0 sm:$0xff]  ;;  %p510_p8 = scmp.ne.s32.totalorder %s361_s18, %s509_s6  ;;  %p515_p10 = scmp.lt.s32.totalorder %s509_s6, %s509_s6 }
  0x1d   :  { %v391_v44 = vld [vmem:[%s712_s8] ss:$0 sm:$0xff] }
  0x1e   :  { %423 = vmatpush3.bf16.msra.mxu1 %v467_v6  ;;  %p516_p11 = por %p515_p10, %p514_p9 }
  0x1f   :  { %424 = vmatprep.subr.bf16.mxu1 %v538_v0  ;;  %441 = vmatpush3.bf16.msra.mxu0 %v474_v13 }
  0x20   :  { %442 = vmatprep.subr.bf16.mxu0 %v538_v0  ;;  %p517_p12 = pnand %p516_p11, %p510_p8 }
  0x22   :  { %425 = vmatpush3.bf16.msra.mxu1 %v468_v7 }
  0x23   :  { %426 = vmatprep.subr.bf16.mxu1 %v538_v0  ;;  %443 = vmatpush3.bf16.msra.mxu0 %v475_v14 }
  0x24   :  { %444 = vmatprep.subr.bf16.mxu0 %v538_v0 }
  0x26   :  { %427 = vmatpush3.bf16.msra.mxu1 %v469_v8 }
  0x27   :  { %428 = vmatprep.subr.bf16.mxu1 %v538_v0  ;;  %445 = vmatpush3.bf16.msra.mxu0 %v476_v15 }
  0x28   :  { %446 = vmatprep.subr.bf16.mxu0 %v538_v0 }
  0x2a   :  { %429 = vmatpush3.bf16.msra.mxu1 %v470_v9 }
  0x2b   :  { %430 = vmatprep.subr.bf16.mxu1 %v538_v0  ;;  %447 = vmatpush3.bf16.msra.mxu0 %v477_v24 }
  0x2c   :  { %448 = vmatprep.subr.bf16.mxu0 %v538_v0 }
  0x2e   :  { %431 = vmatpush3.bf16.msra.mxu1 %v471_v10 }
  0x2f   :  { %432 = vmatprep.subr.bf16.mxu1 %v538_v0  ;;  %449 = vmatpush3.bf16.msra.mxu0 %v478_v25 }
  0x30   :  { %450 = vmatprep.subr.bf16.mxu0 %v538_v0 }
  0x32   :  { %433 = vmatpush3.bf16.msra.mxu1 %v472_v11 }
  0x33   :  { %451 = vmatpush3.bf16.msra.mxu0 %v479_v26 }
  0x34   :  { %452 = vmatprep.subr.bf16.mxu0 %v538_v0 }
  0x37   :  { %453 = vmatpush3.bf16.msra.mxu0 %v480_v27 }
  0xec   :  { %v103_v17 = vpop.f32.mrb[0].mxu0 }
  0xed   :  { %v104_v18 = vadd.f32 %v369_v16, %v103_v17  ;;  %v416_v19 = vpop.f32.mrb[1].mxu0 }
  0xee   :  { %v106_v20 = vpop.f32.mrb[2].mxu0 }
  0xef   :  { %481 = vtanh.f32 %v104_v18  ;;  %v417_v21 = vpop.f32.mrb[3].mxu0 }
  0xf9   :  { %v482_v22 = vpop.eup %481 }
  0xfa   :  { %v110_v23 = vpack.c.bf16 %v482_v22, %v482_v22 }
  0xfc   :  { %435 = vmatmul.mubr.bf16.vlgmr.msra.gmra.mrb[0].mxu1 %v110_v23 }
 0x1cf   :  { %v216_v29 = vpop.f32.mrb[0].mxu1 }
 0x1d0   :  { %v217_v30 = vadd.f32 %v372_v28, %v216_v29  ;;  %v436_v31 = vpop.f32.mrb[1].mxu1 }
 0x1d1   :  { %v219_v32 = vpop.f32.mrb[2].mxu1 }
 0x1d2   :  { %483 = vtanh.f32 %v217_v30  ;;  %v437_v33 = vpop.f32.mrb[3].mxu1 }
 0x1dc   :  { %v484_v34 = vpop.eup %483 }
 0x1dd   :  { %v223_v35 = vpack.c.bf16 %v484_v34, %v484_v34 }
 0x1df   :  { %455 = vmatmul.mubr.bf16.vlgmr.msra.gmra.mrb[4].mxu0 %v223_v35 }
 0x2b2   :  { %v329_v37 = vpop.f32.mrb[4].mxu0 }
 0x2b3   :  { %v330_v38 = vadd.f32 %v381_v36, %v329_v37  ;;  %v456_v39 = vpop.f32.mrb[5].mxu0 }
 0x2b4   :  { %v332_v40 = vpop.f32.mrb[6].mxu0 }
 0x2b5   :  { %485 = vtanh.f32 %v330_v38  ;;  %v457_v41 = vpop.f32.mrb[7].mxu0 }
 0x2bf   :  { %v486_v43 = vpop.eup %485 }
 0x2c0   :  { %v343_v45 = vmul.f32 %v486_v43, %v390_v42 }
 0x2c2   :  { %v351_v46 = vadd.f32 %v391_v44, %v343_v45 }
 0x2c4   :  { %353 = vst.msk [vmem:[#allocation5] sm:$0xff] %vm352_vm2, %v351_v46 }
 0x2c5   :  { %520 = shalt.err (!%p517_p12)
}
 0x2c6   :  { %s521_s20 = scalar_lea.hbm %s713_s9, 128 }
 0x2c7   :  { %p522_p13 = scmp.ne.s32.totalorder %s713_s9, %s521_s20  ;;  %p525_p0 = scmp.lt.u32.totalorder %s521_s20, %s713_s9 }
 0x2c9   :  { %p527_p1 = pnand %p525_p0, %p522_p13 }
 0x2cb   :  { %530 = shalt.err (!%p527_p1)
}
 0x2cc   :  { %363 = dma.vmem_to_hbm [thread:$0]  %s361_s18, 128, %s713_s9, [#allocation4]  }
 0x2cd   :  { %533 = dma.done.wait [#allocation4], 128  }
 0x2ce   :  { %534 = vsyncadd [#allocation4], 4294967168 }
 0x2cf   :  { %367 = vsyncpa [#allocation3], 1 }
 0x2d0   :  { %368 = vsyncpa [#allocation4], 1 }

</bundles_post_ra>
